<compile_context>
chip_gen: v7x
topology: tpu7x:2x2x1
jax: 0.10.0
libtpu: 0.0.40
codegen_flags: <defaults>
</compile_context>

<pallas_src>
import functools

import jax
import jax.numpy as jnp
from jax.experimental import pallas as pl
from jax.experimental.pallas import tpu as pltpu

BN_EPS = 1e-5
LEAKY_SLOPE = 0.2


# ----------------------------------------------------------------------------
# Chip-dependent heuristics (fall back to safe defaults on unknown devices).
# ----------------------------------------------------------------------------
def _device_kind() -> str:
    try:
        return jax.devices()[0].device_kind.lower()
    except Exception:
        return ""


def _is_v7x(kind: str) -> bool:
    return ("v7" in kind) or ("7x" in kind)


def _pick_tile_d(d_pad: int) -> int:
    """Output-feature tile width."""
    if d_pad <= 512:
        return d_pad                      # small-D path: one grid step, W resident
    kind = _device_kind()
    if "v5" in kind:
        return 128                        # v5e: 4x128^2 MXU, slower HBM
    if _is_v7x(kind):
        # 256-wide MXU, but keep >= 2 tiles per TensorCore (2 TCs on v7x).
        return 256 if (d_pad % 256 == 0 and d_pad >= 1024) else 128
    if "v6" in kind and d_pad % 256 == 0:
        return 256                        # v6e: 2x256^2 MXU, halve grid steps
    return 128                            # unknown chip: conservative


def _vmem_limit_bytes(n_pad, d_pad, tile, x_itemsize, w_itemsize, has_xmm) -> int:
    """Size the VMEM budget from the actual block shapes instead of a fixed cap."""
    resident = n_pad * d_pad * x_itemsize              # x (f32), constant index
    if has_xmm:
        resident += n_pad * d_pad * w_itemsize         # matmul-dtype copy of x
    per_step = (d_pad * tile * w_itemsize              # W feature tile
                + 2 * tile * 4                         # fused gamma/beta tile
                + n_pad * tile * x_itemsize)           # output tile
    need = 2 * (resident + per_step)                   # default double-buffering
    need = int(need * 1.25) + (4 << 20)                # compiler headroom
    cap = (48 << 20) if _is_v7x(_device_kind()) else (100 << 20)
    return max(16 << 20, min(need, cap))


# ----------------------------------------------------------------------------
# Kernel
# ----------------------------------------------------------------------------
def _residual_block_kernel(*refs, n_true, pad_n, mxu_stats, has_xmm):
    if has_xmm:
        x_ref, xmm_ref, w_ref, gb_ref, o_ref = refs
    else:
        x_ref, w_ref, gb_ref, o_ref = refs
        xmm_ref = x_ref

    tile_d = o_ref.shape[1]
    j = pl.program_id(0)

    # Linear (no bias -- cancelled exactly by training-mode BN mean
    # subtraction).  MXU matmul with f32 accumulation; the matmul-dtype copy
    # of x was produced once in the wrapper (hoisted cast).
    h = jnp.dot(xmm_ref[...], w_ref[...], preferred_element_type=jnp.float32)

    inv_n = 1.0 / float(n_true)
    if mxu_stats:
        # Ride the column sums on the (otherwise idle) MXU instead of the XLU.
        ones = jnp.ones((8, h.shape[0]), jnp.float32)

        def colsum(a):
            return jnp.dot(ones, a, preferred_element_type=jnp.float32)[0:1, :]
    else:
        def colsum(a):
            return jnp.sum(a, axis=0, keepdims=True)

    # BatchNorm1d training-mode batch statistics (biased variance) over the
    # TRUE batch.  Zero pad rows have h == 0, so they do not perturb the sum;
    # each contributes mean^2 to sum((h - mean)^2), corrected exactly below.
    mean = colsum(h) * inv_n                       # (1, tile_d)
    d = h - mean                                   # computed once, reused
    s2 = colsum(d * d)
    if pad_n:
        s2 = s2 - float(pad_n) * (mean * mean)
    var = s2 * inv_n

    gamma = gb_ref[0:1, :]
    beta = gb_ref[1:2, :]
    scale = gamma * jax.lax.rsqrt(var + BN_EPS)    # gamma folded into rsqrt
    y = d * scale + beta

    # LeakyReLU(0.2)
    act = jnp.where(y > 0, y, LEAKY_SLOPE * y)

    # Residual add against the matching (tile-aligned) columns of resident x.
    col0 = pl.multiple_of(j * tile_d, tile_d)
    x_res = x_ref[:, pl.ds(col0, tile_d)]
    o_ref[...] = (x_res + act).astype(o_ref.dtype)


# ----------------------------------------------------------------------------
# Wrapper
# ----------------------------------------------------------------------------
def residual_block(x, w, b, gamma, beta, *, tile_d=None,
                   matmul_dtype=jnp.bfloat16, mxu_stats=False,
                   single_buffer_x=False):
    """Forward of CTGAN ResidualBlock.  x:(N,D), w:(D,D), b/gamma/beta:(D,)."""
    n, d = x.shape
    assert w.shape == (d, d), "residual add requires input_dim == output_dim"
    # Training-mode BN subtracts the batch mean of fc(x), which cancels the
    # bias exactly.  NOTE: reinstate the bias if this kernel is ever reused
    # with eval-mode / running statistics.
    del b

    matmul_dtype = jnp.dtype(matmul_dtype)
    has_xmm = matmul_dtype != x.dtype

    # Feature axis: lane-dense padding.  Batch axis: full sublanes (16 covers
    # the packed bf16 copy as well).
    d_pad = pl.cdiv(d, 128) * 128
    tile = tile_d if tile_d is not None else _pick_tile_d(d_pad)
    if d_pad % tile != 0:                      # only for user-supplied tile_d
        d_pad = pl.cdiv(d_pad, tile) * tile
    n_pad = pl.cdiv(n, 16) * 16
    pd, pn = d_pad - d, n_pad - n

    # Padded x rows/cols and W rows/cols are zero, so padded h columns are
    # exactly zero; with gamma=1, beta=0 there the padded outputs are zero and
    # are sliced off at the end.  Padded batch rows are handled exactly by the
    # in-kernel variance correction.
    x_p = jnp.pad(x, ((0, pn), (0, pd))) if (pd or pn) else x
    w_p = jnp.pad(w, ((0, pd), (0, pd))) if pd else w
    g_p = jnp.pad(gamma, (0, pd), constant_values=1.0) if pd else gamma
    be_p = jnp.pad(beta, (0, pd)) if pd else beta

    w_p = w_p.astype(matmul_dtype)                      # halves W DMA bytes (bf16)
    gb = jnp.stack([g_p, be_p]).astype(jnp.float32)     # (2, d_pad): one fused DMA

    grid = (d_pad // tile,)

    def resident_spec(shape):
        # x / x_mm have a constant block index -> fetched once regardless of
        # buffering.  Buffered(1) only trims their VMEM footprint (v7x knob).
        if single_buffer_x:
            return pl.BlockSpec(shape, lambda j: (0, 0),
                                pipeline_mode=pl.Buffered(1))
        return pl.BlockSpec(shape, lambda j: (0, 0))

    in_specs = [resident_spec((n_pad, d_pad))]                 # x (f32, residual)
    operands = [x_p]
    if has_xmm:
        in_specs.append(resident_spec((n_pad, d_pad)))         # x in matmul dtype
        operands.append(x_p.astype(matmul_dtype))              # hoisted cast (once)
    in_specs += [
        pl.BlockSpec((d_pad, tile), lambda j: (0, j)),         # W feature tile
        pl.BlockSpec((2, tile), lambda j: (0, j)),             # fused gamma/beta
    ]
    operands += [w_p, gb]

    kernel = functools.partial(
        _residual_block_kernel,
        n_true=n, pad_n=pn, mxu_stats=mxu_stats, has_xmm=has_xmm)

    out = pl.pallas_call(
        kernel,
        out_shape=jax.ShapeDtypeStruct((n_pad, d_pad), x.dtype),
        grid_spec=pltpu.PrefetchScalarGridSpec(
            num_scalar_prefetch=0,
            grid=grid,
            in_specs=in_specs,
            out_specs=pl.BlockSpec((n_pad, tile), lambda j: (0, j)),
        ),
        compiler_params=pltpu.CompilerParams(
            dimension_semantics=("parallel",),     # megacore / v7x dual-TC shard
            vmem_limit_bytes=_vmem_limit_bytes(
                n_pad, d_pad, tile, x_p.dtype.itemsize,
                matmul_dtype.itemsize, has_xmm),
        ),
    )(*operands)

    return out[:n, :d]


# ----------------------------------------------------------------------------
# Pure-JAX reference matching the PyTorch module (bias included).
# ----------------------------------------------------------------------------
def reference(x, w, b, gamma, beta):
    h = x @ w + b
    mean = h.mean(axis=0, keepdims=True)
    var = ((h - mean) ** 2).mean(axis=0, keepdims=True)
    y = gamma * (h - mean) / jnp.sqrt(var + BN_EPS) + beta
    act = jnp.where(y > 0, y, LEAKY_SLOPE * y)
    return x + act


if __name__ == "__main__":
    key = jax.random.PRNGKey(0)

    def make_inputs(k, n, d):
        kx, kw, kb, kg, ke = jax.random.split(k, 5)
        x = jax.random.normal(kx, (n, d), dtype=jnp.float32)
        bound = 1.0 / (d ** 0.5)              # nn.Linear default init range
        w = jax.random.uniform(kw, (d, d), jnp.float32, -bound, bound)
        b = jax.random.uniform(kb, (d,), jnp.float32, -bound, bound)
        gamma = 1.0 + 0.1 * jax.random.normal(kg, (d,), jnp.float32)
        beta = 0.1 * jax.random.normal(ke, (d,), jnp.float32)
        return x, w, b, gamma, beta

    configs = [
        (64, 256),   # small-D single-step path (grid=(1,)), no padding
        (61, 200),   # batch + feature padding and the pad-row variance fix
        (64, 768),   # tiled path: per-chip tile_d (128 or 256), grid > 1
    ]

    for (n, d) in configs:
        key, sub = jax.random.split(key)
        x, w, b, gamma, beta = make_inputs(sub, n, d)
        ref = reference(x, w, b, gamma, beta)

        # Strict check with an f32 matmul path (also verifies bias cancellation
        # and the pad-row variance correction).
        out_f32 = residual_block(x, w, b, gamma, beta, matmul_dtype=jnp.float32)
        jax.block_until_ready(out_f32)
        assert out_f32.shape == (n, d)
        assert jnp.allclose(out_f32, ref, atol=1e-4, rtol=1e-4), \
            f"f32 mismatch vs reference at N={n}, D={d}"

        # Performance path: bf16 MXU inputs, f32 accumulate + f32 epilogue.
        out_bf16 = residual_block(x, w, b, gamma, beta, matmul_dtype=jnp.bfloat16)
        jax.block_until_ready(out_bf16)
        assert out_bf16.shape == (n, d)
        assert jnp.allclose(out_bf16, ref, atol=5e-2, rtol=5e-2), \
            f"bf16 mismatch vs reference at N={n}, D={d}"

    print("KERNEL_OK")
</pallas_src>

<mosaic_0001>
module attributes {stable_mosaic.version = 11 : i64} {
  func.func @_residual_block_kernel(%arg0: i32, %arg1: memref<64x256xf32, #tpu.memory_space<vmem>>, %arg2: memref<256x256xf32, #tpu.memory_space<vmem>>, %arg3: memref<2x256xf32, #tpu.memory_space<vmem>>, %arg4: memref<64x256xf32, #tpu.memory_space<vmem>>) attributes {dimension_semantics = [#tpu.dimension_semantics<parallel>], iteration_bounds = array<i64: 1>, scalar_prefetch = 0 : i64, scratch_operands = 0 : i64, tpu.core_type = #tpu.core_type<tc>, window_params = [{pipeline_mode = #tpu.pipeline_mode<synchronous>, transform_indices = @transform_0, window_bounds = array<i64: 64, 256>}, {transform_indices = @transform_1, window_bounds = array<i64: 256, 256>}, {transform_indices = @transform_2, window_bounds = array<i64: 2, 256>}, {transform_indices = @transform_3, window_bounds = array<i64: 64, 256>}]} {
    %c0 = arith.constant 0 : index
    %c0_0 = arith.constant 0 : index
    %0 = vector.load %arg1[%c0, %c0_0] : memref<64x256xf32, #tpu.memory_space<vmem>>, vector<64x256xf32>
    %c0_1 = arith.constant 0 : index
    %c0_2 = arith.constant 0 : index
    %1 = vector.load %arg2[%c0_1, %c0_2] : memref<256x256xf32, #tpu.memory_space<vmem>>, vector<256x256xf32>
    %cst = arith.constant dense<0.000000e+00> : vector<64x256xf32>
    %2 = tpu.matmul %0, %1, %cst {dimension_numbers = #tpu.dot_dimension_numbers<[1], [0], [0], [1], [0, 0, 1, 1], [], []>} : vector<64x256xf32>, vector<256x256xf32>, vector<64x256xf32> -> vector<64x256xf32>
    %cst_3 = arith.constant dense<0.000000e+00> : vector<256xf32>
    %3 = vector.multi_reduction <add>, %2, %cst_3 [0] : vector<64x256xf32> to vector<256xf32>
    %4 = vector.shape_cast %3 : vector<256xf32> to vector<1x256xf32>
    %cst_4 = arith.constant 1.562500e-02 : f32
    %5 = vector.broadcast %cst_4 : f32 to vector<1x256xf32>
    %6 = arith.mulf %4, %5 : vector<1x256xf32>
    %7 = vector.broadcast %6 : vector<1x256xf32> to vector<64x256xf32>
    %8 = arith.subf %2, %7 : vector<64x256xf32>
    %9 = arith.mulf %8, %8 : vector<64x256xf32>
    %cst_5 = arith.constant dense<0.000000e+00> : vector<256xf32>
    %10 = vector.multi_reduction <add>, %9, %cst_5 [0] : vector<64x256xf32> to vector<256xf32>
    %11 = vector.shape_cast %10 : vector<256xf32> to vector<1x256xf32>
    %cst_6 = arith.constant 1.562500e-02 : f32
    %12 = vector.broadcast %cst_6 : f32 to vector<1x256xf32>
    %13 = arith.mulf %11, %12 : vector<1x256xf32>
    %c0_7 = arith.constant 0 : index
    %c0_8 = arith.constant 0 : index
    %14 = vector.load %arg3[%c0_7, %c0_8] : memref<2x256xf32, #tpu.memory_space<vmem>>, vector<1x256xf32>
    %c1 = arith.constant 1 : index
    %c0_9 = arith.constant 0 : index
    %15 = vector.load %arg3[%c1, %c0_9] : memref<2x256xf32, #tpu.memory_space<vmem>>, vector<1x256xf32>
    %cst_10 = arith.constant 9.99999974E-6 : f32
    %16 = vector.broadcast %cst_10 : f32 to vector<1x256xf32>
    %17 = arith.addf %13, %16 : vector<1x256xf32>
    %18 = math.rsqrt %17 : vector<1x256xf32>
    %19 = arith.mulf %14, %18 : vector<1x256xf32>
    %20 = vector.broadcast %19 : vector<1x256xf32> to vector<64x256xf32>
    %21 = arith.mulf %8, %20 : vector<64x256xf32>
    %22 = vector.broadcast %15 : vector<1x256xf32> to vector<64x256xf32>
    %23 = arith.addf %21, %22 : vector<64x256xf32>
    %cst_11 = arith.constant 0.000000e+00 : f32
    %24 = vector.broadcast %cst_11 : f32 to vector<64x256xf32>
    %25 = arith.cmpf ogt, %23, %24 : vector<64x256xf32>
    %cst_12 = arith.constant 2.000000e-01 : f32
    %26 = vector.broadcast %cst_12 : f32 to vector<64x256xf32>
    %27 = arith.mulf %26, %23 : vector<64x256xf32>
    %28 = arith.select %25, %23, %27 : vector<64x256xi1>, vector<64x256xf32>
    %c256_i32 = arith.constant 256 : i32
    %29 = arith.muli %arg0, %c256_i32 : i32
    %30 = tpu.assume_multiple %29, 256 : i32
    %c0_13 = arith.constant 0 : index
    %31 = arith.index_cast %30 : i32 to index
    %32 = vector.load %arg1[%c0_13, %31] : memref<64x256xf32, #tpu.memory_space<vmem>>, vector<64x256xf32>
    %33 = arith.addf %32, %28 : vector<64x256xf32>
    %c0_14 = arith.constant 0 : index
    %c0_15 = arith.constant 0 : index
    %34 = vector.load %arg4[%c0_14, %c0_15] : memref<64x256xf32, #tpu.memory_space<vmem>>, vector<64x256xf32>
    tpu.vector_store %arg4[%c0_14, %c0_15], %33 {strides = array<i32>} : memref<64x256xf32, #tpu.memory_space<vmem>>, vector<64x256xf32>,
    return
  }
  func.func @transform_0(%arg0: i32) -> (i32, i32) {
    %c0_i32 = arith.constant 0 : i32
    %c0_i32_0 = arith.constant 0 : i32
    %c0_i32_1 = arith.constant 0 : i32
    return %c0_i32, %c0_i32_0 : i32, i32
  }
  func.func @transform_1(%arg0: i32) -> (i32, i32) {
    %c0_i32 = arith.constant 0 : i32
    %c0_i32_0 = arith.constant 0 : i32
    return %c0_i32, %arg0 : i32, i32
  }
  func.func @transform_2(%arg0: i32) -> (i32, i32) {
    %c0_i32 = arith.constant 0 : i32
    %c0_i32_0 = arith.constant 0 : i32
    return %c0_i32, %arg0 : i32, i32
  }
  func.func @transform_3(%arg0: i32) -> (i32, i32) {
    %c0_i32 = arith.constant 0 : i32
    %c0_i32_0 = arith.constant 0 : i32
    return %c0_i32, %arg0 : i32, i32
  }
}

</mosaic_0001>

<bundles_post_ra>
// kernel: tpu_custom_call.1
= control target key start
LH: loop header
LB: loop body
LE: loop exit
PB: predicated region body
PF: predicated region fallthrough
CT: control target
= control target key end

     0   :  { %8 = vsyncpa [#allocation3], 0  ;;  %s941_s0 = inlined_call_operand.hbm [shape: f32[64,256], index: 0, kind: input, shape index: {}]   ;;  %s942_s1 = inlined_call_operand.hbm [shape: f32[256,256], index: 1, kind: input, shape index: {}]   ;;  %s943_s2 = inlined_call_operand.vmem [shape: f32[2,256], index: 2, kind: input, shape index: {}]   ;;  %s944_s3 = inlined_call_operand.hbm [shape: f32[64,256], index: 3, kind: output, shape index: {}]  }
   0x1   :  { %9 = vsyncpa [#allocation6], 0 }
   0x2   :  { %10 = vsyncpa [#allocation4], 0  ;;  %s704_s12 = smov [#allocation2]   ;;  %s632_s16 = scalar_lea.hbm %s941_s0, 2048 }
   0x3   :  { %s16_s13 = sshll.u32 %s704_s12, 4  ;;  %p633_p0 = scmp.ne.s32.totalorder %s941_s0, %s632_s16  ;;  %s17_s13 = int_to_ptr.vmem [resolvable:$true] %s16_s13 }
   0x4   :  { %p636_p1 = scmp.lt.u32.totalorder %s632_s16, %s941_s0 }
   0x6   :  { %p638_p2 = pnand %p636_p1, %p633_p0 }
   0x8   :  { %641 = shalt.err (!%p638_p2)
}
   0x9   :  { %s642_s21 = scalar_lea.vmem %s17_s13, 2048  ;;  %p647_p4 = scmp.lt.s32.totalorder %s17_s13, %s17_s13 }
   0xa   :  { %p643_p3 = scmp.ne.s32.totalorder %s17_s13, %s642_s21  ;;  %p648_p5 = scmp.lt.s32.totalorder %s642_s21, %s642_s21 }
   0xc   :  { %p649_p6 = por %p648_p5, %p647_p4 }
   0xe   :  { %p650_p7 = pnand %p649_p6, %p643_p3 }
  0x10   :  { %653 = shalt.err (!%p650_p7)
}
  0x11   :  { %s705_s22 = smov 256   ;;  %s706_s23 = smov 16  }
  0x12   :  { %22 = dma.hbm_to_vmem [thread:$0]  %s941_s0, 2048, %s17_s13, [#allocation3], %s705_s22, %s705_s22, %s706_s23  }
  0x13   :  { %s707_s26 = smov [#allocation5]   ;;  %s654_s30 = scalar_lea.hbm %s942_s1, 8192 }
  0x14   :  { %s28_s27 = sshll.u32 %s707_s26, 4  ;;  %p655_p8 = scmp.ne.s32.totalorder %s942_s1, %s654_s30  ;;  %s29_s27 = int_to_ptr.vmem [resolvable:$true] %s28_s27 }
  0x15   :  { %p658_p9 = scmp.lt.u32.totalorder %s654_s30, %s942_s1 }
  0x17   :  { %p660_p10 = pnand %p658_p9, %p655_p8 }
  0x19   :  { %663 = shalt.err (!%p660_p10)
}
  0x1a   :  { %s664_s8 = scalar_lea.vmem %s29_s27, 8192  ;;  %p669_p12 = scmp.lt.s32.totalorder %s29_s27, %s29_s27 }
  0x1b   :  { %p665_p11 = scmp.ne.s32.totalorder %s29_s27, %s664_s8  ;;  %p670_p13 = scmp.lt.s32.totalorder %s664_s8, %s664_s8 }
  0x1d   :  { %p671_p0 = por %p670_p13, %p669_p12 }
  0x1f   :  { %p672_p1 = pnand %p671_p0, %p665_p11 }
  0x21   :  { %675 = shalt.err (!%p672_p1)
}
  0x22   :  { %34 = dma.hbm_to_vmem [thread:$0]  %s942_s1, 8192, %s29_s27, [#allocation6], %s705_s22, %s705_s22, %s706_s23  }
  0x23   :  { %698 = dma.done.wait [#allocation3], 2048  }
  0x24   :  { %699 = vsyncadd [#allocation3], 4294965248 }
  0x25   :  { %700 = dma.done.wait [#allocation6], 8192  }
  0x26   :  { %701 = vsyncadd [#allocation6], 4294959104  ;;  %v60_v0 = vld [vmem:[#allocation5 + $0x8] sm:$0xff]  ;;  %v62_v1 = vld [vmem:[#allocation5 + $0x18] sm:$0xff] }
  0x27   :  { %v59_v2 = vld [vmem:[#allocation5] sm:$0xff]  ;;  %v526_v3 = vpack.c.bf16 %v62_v1, %v60_v0  ;;  %v61_v4 = vld [vmem:[#allocation5 + $0x10] sm:$0xff]  ;;  %v64_v5 = vld [vmem:[#allocation5 + $0x28] sm:$0xff] }
  0x28   :  { %v66_v6 = vld [vmem:[#allocation5 + $0x38] sm:$0xff]  ;;  %v528_v7 = vpack.c.bf16 %v61_v4, %v59_v2  ;;  %v63_v9 = vld [vmem:[#allocation5 + $0x20] sm:$0xff]  ;;  %v65_v10 = vld [vmem:[#allocation5 + $0x30] sm:$0xff] }
  0x29   :  { %v530_v8 = vpack.c.bf16 %v66_v6, %v64_v5  ;;  %v68_v11 = vld [vmem:[#allocation5 + $0x48] sm:$0xff]  ;;  %527 = vmatprep.subr.bf16.mxu0 %v526_v3  ;;  %590 = vmatprep.subr.bf16.mxu1 %v526_v3  ;;  %v70_v12 = vld [vmem:[#allocation5 + $0x58] sm:$0xff]  ;;  %v532_v13 = vpack.c.bf16 %v65_v10, %v63_v9  ;;  %v67_v15 = vld [vmem:[#allocation5 + $0x40] sm:$0xff] }
  0x2a   :  { %529 = vmatpush1.bf16.msra.mxu0 %v528_v7  ;;  %606 = vmatpush1.bf16.msra.mxu1 %v528_v7  ;;  %v534_v14 = vpack.c.bf16 %v70_v12, %v68_v11  ;;  %v69_v16 = vld [vmem:[#allocation5 + $0x50] sm:$0xff]  ;;  %v72_v17 = vld [vmem:[#allocation5 + $0x68] sm:$0xff]  ;;  %v74_v18 = vld [vmem:[#allocation5 + $0x78] sm:$0xff] }
  0x2b   :  { %531 = vmatprep.subr.bf16.mxu0 %v530_v8  ;;  %591 = vmatprep.subr.bf16.mxu1 %v530_v8  ;;  %v536_v19 = vpack.c.bf16 %v69_v16, %v67_v15  ;;  %v538_v20 = vpack.c.bf16 %v74_v18, %v72_v17  ;;  %v71_v21 = vld [vmem:[#allocation5 + $0x60] sm:$0xff]  ;;  %v73_v22 = vld [vmem:[#allocation5 + $0x70] sm:$0xff]  ;;  %v76_v23 = vld [vmem:[#allocation5 + $0x88] sm:$0xff] }
  0x2c   :  { %v78_v24 = vld [vmem:[#allocation5 + $0x98] sm:$0xff]  ;;  %v540_v25 = vpack.c.bf16 %v73_v22, %v71_v21  ;;  %v75_v27 = vld [vmem:[#allocation5 + $0x80] sm:$0xff]  ;;  %v77_v28 = vld [vmem:[#allocation5 + $0x90] sm:$0xff] }
  0x2d   :  { %v542_v26 = vpack.c.bf16 %v78_v24, %v76_v23  ;;  %v80_v29 = vld [vmem:[#allocation5 + $0xa8] sm:$0xff]  ;;  %v82_v30 = vld [vmem:[#allocation5 + $0xb8] sm:$0xff]  ;;  %v544_v31 = vpack.c.bf16 %v77_v28, %v75_v27  ;;  %v79_v33 = vld [vmem:[#allocation5 + $0xa0] sm:$0xff] }
  0x2e   :  { %533 = vmatpush1.bf16.msra.mxu0 %v532_v13  ;;  %607 = vmatpush1.bf16.msra.mxu1 %v532_v13  ;;  %v546_v32 = vpack.c.bf16 %v82_v30, %v80_v29  ;;  %v81_v34 = vld [vmem:[#allocation5 + $0xb0] sm:$0xff]  ;;  %v84_v35 = vld [vmem:[#allocation5 + $0xc8] sm:$0xff]  ;;  %v86_v36 = vld [vmem:[#allocation5 + $0xd8] sm:$0xff] }
  0x2f   :  { %535 = vmatprep.subr.bf16.mxu0 %v534_v14  ;;  %592 = vmatprep.subr.bf16.mxu1 %v534_v14  ;;  %v548_v37 = vpack.c.bf16 %v81_v34, %v79_v33  ;;  %v550_v38 = vpack.c.bf16 %v86_v36, %v84_v35  ;;  %v83_v39 = vld [vmem:[#allocation5 + $0xc0] sm:$0xff]  ;;  %v85_v40 = vld [vmem:[#allocation5 + $0xd0] sm:$0xff]  ;;  %v760_v41 = vld [vmem:[#allocation2 + $0x8] sm:$0xff] }
  0x30   :  { %v88_v42 = vld [vmem:[#allocation5 + $0xe8] sm:$0xff]  ;;  %v90_v43 = vld [vmem:[#allocation5 + $0xf8] sm:$0xff]  ;;  %187 = vmatprep.mubr.f32.mxu0 %v760_v41  ;;  %v552_v45 = vpack.c.bf16 %v85_v40, %v83_v39  ;;  %v87_v47 = vld [vmem:[#allocation5 + $0xe0] sm:$0xff] }
  0x31   :  { %v763_v44 = vld [vmem:[#allocation2 + $0x48] sm:$0xff]  ;;  %v554_v46 = vpack.c.bf16 %v90_v43, %v88_v42  ;;  %v89_v48 = vld [vmem:[#allocation5 + $0xf0] sm:$0xff]  ;;  %v94_v50 = vld [vmem:[#allocation5 + $0x118] sm:$0xff] }
  0x32   :  { %537 = vmatpush1.bf16.msra.mxu0 %v536_v19  ;;  %608 = vmatpush1.bf16.msra.mxu1 %v536_v19  ;;  %v92_v49 = vld [vmem:[#allocation5 + $0x108] sm:$0xff]  ;;  %v556_v51 = vpack.c.bf16 %v89_v48, %v87_v47  ;;  %v91_v53 = vld [vmem:[#allocation5 + $0x100] sm:$0xff]  ;;  %v93_v54 = vld [vmem:[#allocation5 + $0x110] sm:$0xff] }
  0x33   :  { %539 = vmatprep.subr.bf16.mxu0 %v538_v20  ;;  %593 = vmatprep.subr.bf16.mxu1 %v538_v20  ;;  %v558_v52 = vpack.c.bf16 %v94_v50, %v92_v49  ;;  %v96_v55 = vld [vmem:[#allocation5 + $0x128] sm:$0xff]  ;;  %v98_v56 = vld [vmem:[#allocation5 + $0x138] sm:$0xff]  ;;  %v560_v57 = vpack.c.bf16 %v93_v54, %v91_v53  ;;  %v95_v59 = vld [vmem:[#allocation5 + $0x120] sm:$0xff] }
  0x34   :  { %211 = vmatprep.mubr.f32.mxu1 %v763_v44  ;;  %v562_v58 = vpack.c.bf16 %v98_v56, %v96_v55  ;;  %v97_v60 = vld [vmem:[#allocation5 + $0x130] sm:$0xff]  ;;  %v100_v61 = vld [vmem:[#allocation5 + $0x148] sm:$0xff]  ;;  %v102_v62 = vld [vmem:[#allocation5 + $0x158] sm:$0xff] }
  0x35   :  { %v564_v63 = vpack.c.bf16 %v97_v60, %v95_v59  ;;  %v566_v0 = vpack.c.bf16 %v102_v62, %v100_v61  ;;  %v99_v1 = vld [vmem:[#allocation5 + $0x140] sm:$0xff]  ;;  %v101_v2 = vld [vmem:[#allocation5 + $0x150] sm:$0xff]  ;;  %v104_v3 = vld [vmem:[#allocation5 + $0x168] sm:$0xff] }
  0x36   :  { %541 = vmatpush1.bf16.msra.mxu0 %v540_v25  ;;  %609 = vmatpush1.bf16.msra.mxu1 %v540_v25  ;;  %v106_v4 = vld [vmem:[#allocation5 + $0x178] sm:$0xff]  ;;  %v568_v5 = vpack.c.bf16 %v101_v2, %v99_v1  ;;  %v103_v7 = vld [vmem:[#allocation5 + $0x160] sm:$0xff]  ;;  %v105_v8 = vld [vmem:[#allocation5 + $0x170] sm:$0xff] }
  0x37   :  { %543 = vmatprep.subr.bf16.mxu0 %v542_v26  ;;  %594 = vmatprep.subr.bf16.mxu1 %v542_v26  ;;  %v570_v6 = vpack.c.bf16 %v106_v4, %v104_v3  ;;  %v108_v9 = vld [vmem:[#allocation5 + $0x188] sm:$0xff]  ;;  %v110_v10 = vld [vmem:[#allocation5 + $0x198] sm:$0xff]  ;;  %v572_v11 = vpack.c.bf16 %v105_v8, %v103_v7  ;;  %v107_v13 = vld [vmem:[#allocation5 + $0x180] sm:$0xff] }
  0x38   :  { %v574_v12 = vpack.c.bf16 %v110_v10, %v108_v9  ;;  %v109_v14 = vld [vmem:[#allocation5 + $0x190] sm:$0xff]  ;;  %v112_v15 = vld [vmem:[#allocation5 + $0x1a8] sm:$0xff]  ;;  %v114_v16 = vld [vmem:[#allocation5 + $0x1b8] sm:$0xff] }
  0x39   :  { %v576_v17 = vpack.c.bf16 %v109_v14, %v107_v13  ;;  %v578_v18 = vpack.c.bf16 %v114_v16, %v112_v15  ;;  %v111_v19 = vld [vmem:[#allocation5 + $0x1a0] sm:$0xff]  ;;  %v113_v20 = vld [vmem:[#allocation5 + $0x1b0] sm:$0xff]  ;;  %v116_v21 = vld [vmem:[#allocation5 + $0x1c8] sm:$0xff] }
  0x3a   :  { %545 = vmatpush1.bf16.msra.mxu0 %v544_v31  ;;  %610 = vmatpush1.bf16.msra.mxu1 %v544_v31  ;;  %v118_v22 = vld [vmem:[#allocation5 + $0x1d8] sm:$0xff]  ;;  %v580_v23 = vpack.c.bf16 %v113_v20, %v111_v19  ;;  %v115_v25 = vld [vmem:[#allocation5 + $0x1c0] sm:$0xff]  ;;  %v117_v26 = vld [vmem:[#allocation5 + $0x1d0] sm:$0xff] }
  0x3b   :  { %547 = vmatprep.subr.bf16.mxu0 %v546_v32  ;;  %595 = vmatprep.subr.bf16.mxu1 %v546_v32  ;;  %v582_v24 = vpack.c.bf16 %v118_v22, %v116_v21  ;;  %v120_v27 = vld [vmem:[#allocation5 + $0x1e8] sm:$0xff]  ;;  %v122_v28 = vld [vmem:[#allocation5 + $0x1f8] sm:$0xff]  ;;  %v584_v29 = vpack.c.bf16 %v117_v26, %v115_v25  ;;  %v119_v31 = vld [vmem:[#allocation5 + $0x1e0] sm:$0xff] }
  0x3c   :  { %v586_v30 = vpack.c.bf16 %v122_v28, %v120_v27  ;;  %v121_v32 = vld [vmem:[#allocation5 + $0x1f0] sm:$0xff]  ;;  %v766_v34 = vld [vmem:[#allocation2] sm:$0xff]  ;;  %v770_v36 = vld [vmem:[#allocation2 + $0x18] sm:$0xff] }
  0x3d   :  { %v588_v33 = vpack.c.bf16 %v121_v32, %v119_v31  ;;  %v768_v35 = vld [vmem:[#allocation2 + $0x40] sm:$0xff]  ;;  %v780_v39 = vld [vmem:[#allocation2 + $0x50] sm:$0xff]  ;;  %v782_v40 = vld [vmem:[#allocation2 + $0x28] sm:$0xff] }
  0x3e   :  { %549 = vmatpush1.bf16.msra.mxu0 %v548_v37  ;;  %611 = vmatpush1.bf16.msra.mxu1 %v548_v37  ;;  %v772_v37 = vld [vmem:[#allocation2 + $0x58] sm:$0xff]  ;;  %v784_v42 = vld [vmem:[#allocation2 + $0x68] sm:$0xff]  ;;  %v789_v43 = vld [vmem:[#allocation2 + $0x20] sm:$0xff] }
  0x3f   :  { %551 = vmatprep.subr.bf16.mxu0 %v550_v38  ;;  %596 = vmatprep.subr.bf16.mxu1 %v550_v38  ;;  %v777_v38 = vld [vmem:[#allocation2 + $0x10] sm:$0xff]  ;;  %v796_v47 = vld [vmem:[#allocation2 + $0x78] sm:$0xff] }
  0x40   :  { %v801_v48 = vld [vmem:[#allocation2 + $0x30] sm:$0xff] }
  0x41   :  { %v804_v49 = vld [vmem:[#allocation2 + $0x70] sm:$0xff] }
  0x42   :  { %553 = vmatpush1.bf16.msra.mxu0 %v552_v45  ;;  %612 = vmatpush1.bf16.msra.mxu1 %v552_v45  ;;  %v792_v45 = vld [vmem:[#allocation2 + $0x60] sm:$0xff] }
  0x43   :  { %555 = vmatprep.subr.bf16.mxu0 %v554_v46  ;;  %597 = vmatprep.subr.bf16.mxu1 %v554_v46  ;;  %v794_v46 = vld [vmem:[#allocation2 + $0x38] sm:$0xff] }
  0x46   :  { %557 = vmatpush1.bf16.msra.mxu0 %v556_v51  ;;  %613 = vmatpush1.bf16.msra.mxu1 %v556_v51 }
  0x47   :  { %559 = vmatprep.subr.bf16.mxu0 %v558_v52  ;;  %598 = vmatprep.subr.bf16.mxu1 %v558_v52 }
  0x4a   :  { %561 = vmatpush1.bf16.msra.mxu0 %v560_v57  ;;  %614 = vmatpush1.bf16.msra.mxu1 %v560_v57 }
  0x4b   :  { %563 = vmatprep.subr.bf16.mxu0 %v562_v58  ;;  %599 = vmatprep.subr.bf16.mxu1 %v562_v58 }
  0x4e   :  { %565 = vmatpush1.bf16.msra.mxu0 %v564_v63  ;;  %615 = vmatpush1.bf16.msra.mxu1 %v564_v63 }
  0x4f   :  { %567 = vmatprep.subr.bf16.mxu0 %v566_v0  ;;  %600 = vmatprep.subr.bf16.mxu1 %v566_v0 }
  0x52   :  { %569 = vmatpush1.bf16.msra.mxu0 %v568_v5  ;;  %616 = vmatpush1.bf16.msra.mxu1 %v568_v5 }
  0x53   :  { %571 = vmatprep.subr.bf16.mxu0 %v570_v6  ;;  %601 = vmatprep.subr.bf16.mxu1 %v570_v6 }
  0x56   :  { %573 = vmatpush1.bf16.msra.mxu0 %v572_v11  ;;  %617 = vmatpush1.bf16.msra.mxu1 %v572_v11 }
  0x57   :  { %575 = vmatprep.subr.bf16.mxu0 %v574_v12  ;;  %602 = vmatprep.subr.bf16.mxu1 %v574_v12 }
  0x5a   :  { %577 = vmatpush1.bf16.msra.mxu0 %v576_v17  ;;  %618 = vmatpush1.bf16.msra.mxu1 %v576_v17 }
  0x5b   :  { %579 = vmatprep.subr.bf16.mxu0 %v578_v18  ;;  %603 = vmatprep.subr.bf16.mxu1 %v578_v18 }
  0x5e   :  { %581 = vmatpush1.bf16.msra.mxu0 %v580_v23  ;;  %619 = vmatpush1.bf16.msra.mxu1 %v580_v23 }
  0x5f   :  { %583 = vmatprep.subr.bf16.mxu0 %v582_v24  ;;  %604 = vmatprep.subr.bf16.mxu1 %v582_v24 }
  0x62   :  { %585 = vmatpush1.bf16.msra.mxu0 %v584_v29  ;;  %620 = vmatpush1.bf16.msra.mxu1 %v584_v29 }
  0x63   :  { %587 = vmatprep.subr.bf16.mxu0 %v586_v30  ;;  %605 = vmatprep.subr.bf16.mxu1 %v586_v30 }
  0x66   :  { %589 = vmatpush1.bf16.msra.mxu0 %v588_v33  ;;  %621 = vmatpush1.bf16.msra.mxu1 %v588_v33 }
  0x69   :  { %188 = vmatmul.mubr.f32.vlgmr.msra.gmra.mrb[0].mxu0 %v766_v34  ;;  %212 = vmatmul.mubr.f32.vlgmr.msra.gmra.mrb[0].mxu1 %v768_v35 }
  0x6a   :  { %193 = vmatprep.mubr.f32.mxu0 %v770_v36  ;;  %217 = vmatprep.mubr.f32.mxu1 %v772_v37 }
  0x6d   :  { %194 = vmatmul.mubr.f32.gmra.mrb[2].mxu0 %v777_v38  ;;  %218 = vmatmul.mubr.f32.gmra.mrb[2].mxu1 %v780_v39 }
  0x6e   :  { %199 = vmatprep.mubr.f32.mxu0 %v782_v40  ;;  %223 = vmatprep.mubr.f32.mxu1 %v784_v42 }
  0x71   :  { %200 = vmatmul.mubr.f32.gmra.mrb[4].mxu0 %v789_v43  ;;  %224 = vmatmul.mubr.f32.gmra.mrb[4].mxu1 %v792_v45 }
  0x72   :  { %205 = vmatprep.mubr.f32.mxu0 %v794_v46  ;;  %229 = vmatprep.mubr.f32.mxu1 %v796_v47 }
  0x75   :  { %206 = vmatmul.mubr.f32.gmra.mrb[6].mxu0 %v801_v48  ;;  %230 = vmatmul.mubr.f32.gmra.mrb[6].mxu1 %v804_v49 }
 0x13c   :  { %v189_v50 = vpop.f32.mrb[0].mxu0  ;;  %v213_v51 = vpop.f32.mrb[0].mxu1 }
 0x13d   :  { %v191_v52 = vpop.f32.mrb[1].mxu0  ;;  %v215_v53 = vpop.f32.mrb[1].mxu1 }
 0x140   :  { %v195_v54 = vpop.f32.mrb[2].mxu0  ;;  %v219_v55 = vpop.f32.mrb[2].mxu1 }
 0x141   :  { %v236_v56 = vadd.f32 %v195_v54, %v189_v50  ;;  %v197_v57 = vpop.f32.mrb[3].mxu0  ;;  %v221_v58 = vpop.f32.mrb[3].mxu1 }
 0x142   :  { %v249_v59 = vadd.f32 %v197_v57, %v191_v52 }
 0x144   :  { %v201_v60 = vpop.f32.mrb[4].mxu0  ;;  %v225_v61 = vpop.f32.mrb[4].mxu1 }
 0x145   :  { %v237_v62 = vadd.f32 %v236_v56, %v201_v60  ;;  %v203_v63 = vpop.f32.mrb[5].mxu0  ;;  %v227_v0 = vpop.f32.mrb[5].mxu1 }
 0x146   :  { %v250_v1 = vadd.f32 %v249_v59, %v203_v63 }
 0x148   :  { %v207_v2 = vpop.f32.mrb[6].mxu0  ;;  %v231_v3 = vpop.f32.mrb[6].mxu1 }
 0x149   :  { %v238_v4 = vadd.f32 %v237_v62, %v207_v2  ;;  %v209_v5 = vpop.f32.mrb[7].mxu0  ;;  %v233_v6 = vpop.f32.mrb[7].mxu1 }
 0x14a   :  { %v251_v7 = vadd.f32 %v250_v1, %v209_v5 }
 0x14b   :  { %v239_v8 = vadd.f32 %v238_v4, %v213_v51 }
 0x14c   :  { %v252_v9 = vadd.f32 %v251_v7, %v215_v53 }
 0x14d   :  { %v240_v10 = vadd.f32 %v239_v8, %v219_v55 }
 0x14e   :  { %v253_v11 = vadd.f32 %v252_v9, %v221_v58 }
 0x14f   :  { %v241_v12 = vadd.f32 %v240_v10, %v225_v61 }
 0x150   :  { %v254_v13 = vadd.f32 %v253_v11, %v227_v0 }
 0x151   :  { %v242_v14 = vadd.f32 %v241_v12, %v231_v3 }
 0x152   :  { %v255_v15 = vadd.f32 %v254_v13, %v233_v6 }
 0x153   :  { %v243_v16 = vrot.slane %v242_v14, 4 }
 0x154   :  { %v256_v17 = vrot.slane %v255_v15, 4 }
 0x155   :  { %v244_v18 = vadd.f32 %v243_v16, %v242_v14 }
 0x156   :  { %v257_v19 = vadd.f32 %v256_v17, %v255_v15 }
 0x157   :  { %v245_v20 = vrot.slane %v244_v18, 2 }
 0x158   :  { %v258_v21 = vrot.slane %v257_v19, 2 }
 0x159   :  { %v246_v22 = vadd.f32 %v245_v20, %v244_v18 }
 0x15a   :  { %v259_v23 = vadd.f32 %v258_v21, %v257_v19 }
 0x15b   :  { %v247_v24 = vrot.slane %v246_v22, 1 }
 0x15c   :  { %v260_v25 = vrot.slane %v259_v23, 1 }
 0x15d   :  { %v248_v26 = vadd.f32 %v247_v24, %v246_v22 }
 0x15e   :  { %v261_v27 = vadd.f32 %v260_v25, %v259_v23 }
 0x15f   :  { %v262_v28 = vmul.f32 0.015625, %v248_v26 }
 0x160   :  { %v263_v29 = vmul.f32 0.015625, %v261_v27 }
 0x161   :  { %v808_v30 = vsub.f32 %v189_v50, %v262_v28  ;;  %v810_v31 = vsub.f32 %v195_v54, %v262_v28  ;;  %v812_v32 = vsub.f32 %v201_v60, %v262_v28  ;;  %v814_v33 = vsub.f32 %v207_v2, %v262_v28 }
 0x162   :  { %v816_v56 = vsub.f32 %v213_v51, %v262_v28  ;;  %v818_v59 = vsub.f32 %v219_v55, %v262_v28  ;;  %v820_v62 = vsub.f32 %v225_v61, %v262_v28  ;;  %v822_v1 = vsub.f32 %v231_v3, %v262_v28 }
 0x163   :  { %v280_v4 = vmul.f32 %v808_v30, %v808_v30  ;;  %v282_v50 = vmul.f32 %v810_v31, %v810_v31  ;;  %v284_v54 = vmul.f32 %v812_v32, %v812_v32  ;;  %v286_v60 = vmul.f32 %v814_v33, %v814_v33 }
 0x164   :  { %v832_v2 = vsub.f32 %v191_v52, %v263_v29  ;;  %v834_v55 = vsub.f32 %v197_v57, %v263_v29  ;;  %v836_v61 = vsub.f32 %v203_v63, %v263_v29  ;;  %v838_v3 = vsub.f32 %v209_v5, %v263_v29 }
 0x165   :  { %v296_v51 = vadd.f32 %v282_v50, %v280_v4  ;;  %v840_v7 = vsub.f32 %v215_v53, %v263_v29  ;;  %v842_v8 = vsub.f32 %v221_v58, %v263_v29  ;;  %v844_v9 = vsub.f32 %v227_v0, %v263_v29 }
 0x166   :  { %v846_v11 = vsub.f32 %v233_v6, %v263_v29  ;;  %v281_v12 = vmul.f32 %v832_v2, %v832_v2  ;;  %v283_v52 = vmul.f32 %v834_v55, %v834_v55  ;;  %v288_v57 = vmul.f32 %v816_v56, %v816_v56 }
 0x167   :  { %v297_v10 = vadd.f32 %v296_v51, %v284_v54  ;;  %v285_v53 = vmul.f32 %v836_v61, %v836_v61  ;;  %v290_v0 = vmul.f32 %v818_v59, %v818_v59  ;;  %v287_v6 = vmul.f32 %v838_v3, %v838_v3 }
 0x168   :  { %v309_v58 = vadd.f32 %v283_v52, %v281_v12  ;;  %v292_v14 = vmul.f32 %v820_v62, %v820_v62  ;;  %v289_v16 = vmul.f32 %v840_v7, %v840_v7  ;;  %v294_v18 = vmul.f32 %v822_v1, %v822_v1 }
 0x169   :  { %v298_v63 = vadd.f32 %v297_v10, %v286_v60  ;;  %v291_v20 = vmul.f32 %v842_v8, %v842_v8  ;;  %v293_v23 = vmul.f32 %v844_v9, %v844_v9  ;;  %v295_v26 = vmul.f32 %v846_v11, %v846_v11 }
 0x16a   :  { %v310_v13 = vadd.f32 %v309_v58, %v285_v53 }
 0x16b   :  { %v299_v5 = vadd.f32 %v298_v63, %v288_v57 }
 0x16c   :  { %v311_v17 = vadd.f32 %v310_v13, %v287_v6  ;;  %v708_v6 = vmov 1966171168  }
 0x16d   :  { %v300_v15 = vadd.f32 %v299_v5, %v290_v0  ;;  %v335_v13 = vunpack.c.l.s4 %v708_v6 }
 0x16e   :  { %v312_v21 = vadd.f32 %v311_v17, %v289_v16 }
 0x16f   :  { %v301_v19 = vadd.f32 %v300_v15, %v292_v14  ;;  %v337_v14 = vlaneseq  ;;  %v336_v15 = vunpack.c.0.s8 %v335_v13 }
 0x170   :  { %v313_v24 = vadd.f32 %v312_v21, %v291_v20 }
 0x171   :  { %v302_v22 = vadd.f32 %v301_v19, %v294_v18  ;;  %v338_v16 = vshrl.u32 %v337_v14, 7 }
 0x172   :  { %v314_v27 = vadd.f32 %v313_v24, %v293_v23 }
 0x173   :  { %v303_v25 = vrot.slane %v302_v22, 4  ;;  %v339_v18 = vsub.s32 %v336_v15, %v338_v16  ;;  %v353_v24 = vsub.s32 0, %v338_v16 }
 0x174   :  { %v315_v29 = vadd.f32 %v314_v27, %v295_v26  ;;  %v525_v26 = vld [vmem:[%s943_s2 + $0x1] ss:$2 sm:$0x3] }
 0x175   :  { %v304_v28 = vadd.f32 %v303_v25, %v302_v22  ;;  %v324_v22 = vld [vmem:[%s943_s2] ss:$2 sm:$0x3]  ;;  %v357_v25 = vsub.s32 1, %v338_v16  ;;  %s709_s2 = smov [#allocation7]  }
 0x176   :  { %v316_v50 = vrot.slane %v315_v29, 4  ;;  %s510_s13 = sshll.u32 %s709_s2, 4  ;;  %s511_s13 = int_to_ptr.vmem [resolvable:$true] %s510_s13 }
 0x177   :  { %v305_v4 = vrot.slane %v304_v28, 2  ;;  %s676_s14 = scalar_lea.vmem %s511_s13, 2048  ;;  %p681_p3 = scmp.lt.s32.totalorder %s511_s13, %s511_s13 }
 0x178   :  { %v317_v60 = vadd.f32 %v316_v50, %v315_v29  ;;  %v385_v50 = vrot.slane %v525_v26, %v357_v25  ;;  %p677_p2 = scmp.ne.s32.totalorder %s511_s13, %s676_s14  ;;  %p682_p4 = scmp.lt.s32.totalorder %s676_s14, %s676_s14 }
 0x179   :  { %v306_v54 = vadd.f32 %v305_v4, %v304_v28  ;;  %v381_v4 = vrot.slane %v525_v26, %v353_v24 }
 0x17a   :  { %v318_v10 = vrot.slane %v317_v60, 2  ;;  %p683_p5 = por %p682_p4, %p681_p3 }
 0x17b   :  { %v307_v51 = vrot.slane %v306_v54, 1 }
 0x17c   :  { %v319_v52 = vadd.f32 %v318_v10, %v317_v60  ;;  %p684_p6 = pnand %p683_p5, %p677_p2 }
 0x17d   :  { %v308_v12 = vadd.f32 %v307_v51, %v306_v54 }
 0x17e   :  { %v320_v63 = vrot.slane %v319_v52, 1 }
 0x17f   :  { %v322_v57 = vmul.f32 0.015625, %v308_v12 }
 0x180   :  { %v321_v58 = vadd.f32 %v320_v63, %v319_v52 }
 0x181   :  { %v327_v53 = vadd.f32 1e-05, %v322_v57 }
 0x182   :  { %v323_v0 = vmul.f32 0.015625, %v321_v58 }
 0x183   :  { %628 = vrsqrt.f32 %v327_v53 }
 0x184   :  { %v328_v5 = vadd.f32 1e-05, %v323_v0 }
 0x186   :  { %630 = vrsqrt.f32 %v328_v5 }
 0x18d   :  { %v629_v17 = vpop.eup %628 }
 0x190   :  { %v631_v19 = vpop.eup %630 }
 0x191   :  { %v333_v20 = vcombine.low %v629_v17, %v631_v19 }
 0x193   :  { %v340_v21 = vrot.slane %v333_v20, %v339_v18 }
 0x195   :  { %v347_v23 = vrot.slane %v340_v21, %v339_v18 }
 0x197   :  { %v349_v27 = vmul.f32 %v347_v23, %v324_v22 }
 0x199   :  { %v354_v28 = vrot.slane %v349_v27, %v353_v24  ;;  %v358_v29 = vrot.slane %v349_v27, %v357_v25 }
 0x19b   :  { %v361_v54 = vmul.f32 %v354_v28, %v808_v30  ;;  %v362_v60 = vmul.f32 %v358_v29, %v832_v2  ;;  %v363_v51 = vmul.f32 %v354_v28, %v810_v31  ;;  %v364_v10 = vmul.f32 %v358_v29, %v834_v55 }
 0x19c   :  { %v365_v12 = vmul.f32 %v354_v28, %v812_v32  ;;  %v366_v52 = vmul.f32 %v358_v29, %v836_v61  ;;  %v367_v57 = vmul.f32 %v354_v28, %v814_v33  ;;  %v368_v63 = vmul.f32 %v358_v29, %v838_v3 }
 0x19d   :  { %v369_v53 = vmul.f32 %v354_v28, %v816_v56  ;;  %v370_v58 = vmul.f32 %v358_v29, %v840_v7  ;;  %v371_v30 = vmul.f32 %v354_v28, %v818_v59  ;;  %v372_v2 = vmul.f32 %v358_v29, %v842_v8 }
 0x19e   :  { %v373_v31 = vmul.f32 %v354_v28, %v820_v62  ;;  %v374_v55 = vmul.f32 %v358_v29, %v844_v9  ;;  %v375_v32 = vmul.f32 %v354_v28, %v822_v1  ;;  %v376_v61 = vmul.f32 %v358_v29, %v846_v11 }
 0x19f   :  { %v388_v0 = vadd.f32 %v381_v4, %v361_v54  ;;  %v389_v33 = vadd.f32 %v385_v50, %v362_v60  ;;  %v390_v5 = vadd.f32 %v381_v4, %v363_v51  ;;  %v391_v3 = vadd.f32 %v385_v50, %v364_v10 }
 0x1a0   :  { %v392_v6 = vadd.f32 %v381_v4, %v365_v12  ;;  %v393_v56 = vadd.f32 %v385_v50, %v366_v52  ;;  %v394_v13 = vadd.f32 %v381_v4, %v367_v57  ;;  %v395_v7 = vadd.f32 %v385_v50, %v368_v63 }
 0x1a1   :  { %v396_v14 = vadd.f32 %v381_v4, %v369_v53  ;;  %v397_v59 = vadd.f32 %v385_v50, %v370_v58  ;;  %v398_v15 = vadd.f32 %v381_v4, %v371_v30  ;;  %v399_v8 = vadd.f32 %v385_v50, %v372_v2 }
 0x1a2   :  { %v400_v16 = vadd.f32 %v381_v4, %v373_v31  ;;  %v401_v62 = vadd.f32 %v385_v50, %v374_v55  ;;  %v402_v17 = vadd.f32 %v381_v4, %v375_v32  ;;  %v403_v9 = vadd.f32 %v385_v50, %v376_v61 }
 0x1a3   :  { %vm404_vm0 = vcmp.gt.f32.partialorder %v388_v0, 0.0  ;;  %vm405_vm1 = vcmp.gt.f32.partialorder %v389_v33, 0.0  ;;  %vm406_vm2 = vcmp.gt.f32.partialorder %v390_v5, 0.0  ;;  %vm407_vm3 = vcmp.gt.f32.partialorder %v391_v3, 0.0 }
 0x1a4   :  { %vm408_vm4 = vcmp.gt.f32.partialorder %v392_v6, 0.0  ;;  %vm409_vm5 = vcmp.gt.f32.partialorder %v393_v56, 0.0  ;;  %vm410_vm6 = vcmp.gt.f32.partialorder %v394_v13, 0.0  ;;  %vm411_vm7 = vcmp.gt.f32.partialorder %v395_v7, 0.0 }
 0x1a5   :  { %vm412_vm8 = vcmp.gt.f32.partialorder %v396_v14, 0.0  ;;  %vm413_vm9 = vcmp.gt.f32.partialorder %v397_v59, 0.0  ;;  %vm414_vm10 = vcmp.gt.f32.partialorder %v398_v15, 0.0  ;;  %vm415_vm11 = vcmp.gt.f32.partialorder %v399_v8, 0.0 }
 0x1a6   :  { %vm416_vm12 = vcmp.gt.f32.partialorder %v400_v16, 0.0  ;;  %vm417_vm13 = vcmp.gt.f32.partialorder %v401_v62, 0.0  ;;  %vm418_vm14 = vcmp.gt.f32.partialorder %v402_v17, 0.0  ;;  %vm419_vm15 = vcmp.gt.f32.partialorder %v403_v9, 0.0 }
 0x1a7   :  { %v420_v1 = vmul.f32 0.2, %v388_v0  ;;  %v421_v11 = vmul.f32 0.2, %v389_v33  ;;  %v422_v18 = vmul.f32 0.2, %v390_v5 }
 0x1a8   :  { %v423_v19 = vmul.f32 0.2, %v391_v3  ;;  %v424_v20 = vmul.f32 0.2, %v392_v6  ;;  %v425_v21 = vmul.f32 0.2, %v393_v56 }
 0x1a9   :  { %v426_v22 = vmul.f32 0.2, %v394_v13  ;;  %v427_v23 = vmul.f32 0.2, %v395_v7  ;;  %v428_v24 = vmul.f32 0.2, %v396_v14  ;;  %v436_v25 = vsel %vm404_vm0, %v388_v0, %v420_v1 }
 0x1aa   :  { %v429_v26 = vmul.f32 0.2, %v397_v59  ;;  %v430_v27 = vmul.f32 0.2, %v398_v15  ;;  %v431_v28 = vmul.f32 0.2, %v399_v8  ;;  %v437_v29 = vsel %vm405_vm1, %v389_v33, %v421_v11 }
 0x1ab   :  { %v432_v4 = vmul.f32 0.2, %v400_v16  ;;  %v433_v50 = vmul.f32 0.2, %v401_v62  ;;  %v434_v54 = vmul.f32 0.2, %v402_v17  ;;  %v438_v60 = vsel %vm406_vm2, %v390_v5, %v422_v18 }
 0x1ac   :  { %v435_v51 = vmul.f32 0.2, %v403_v9  ;;  %v439_v10 = vsel %vm407_vm3, %v391_v3, %v423_v19  ;;  %v440_v12 = vsel %vm408_vm4, %v392_v6, %v424_v20  ;;  %v441_v52 = vsel %vm409_vm5, %v393_v56, %v425_v21 }
 0x1ad   :  { %v442_v57 = vsel %vm410_vm6, %v394_v13, %v426_v22  ;;  %v443_v63 = vsel %vm411_vm7, %v395_v7, %v427_v23  ;;  %v444_v53 = vsel %vm412_vm8, %v396_v14, %v428_v24  ;;  %v445_v58 = vsel %vm413_vm9, %v397_v59, %v429_v26 }
 0x1ae   :  { %v446_v30 = vsel %vm414_vm10, %v398_v15, %v430_v27  ;;  %v447_v2 = vsel %vm415_vm11, %v399_v8, %v431_v28  ;;  %v448_v31 = vsel %vm416_vm12, %v400_v16, %v432_v4  ;;  %v449_v55 = vsel %vm417_vm13, %v401_v62, %v433_v50 }
 0x1af   :  { %v450_v32 = vsel %vm418_vm14, %v402_v17, %v434_v54  ;;  %v451_v61 = vsel %vm419_vm15, %v403_v9, %v435_v51  ;;  %v473_v0 = vadd.f32 %v436_v25, %v766_v34  ;;  %v474_v33 = vadd.f32 %v437_v29, %v760_v41 }
 0x1b0   :  { %v475_v5 = vadd.f32 %v438_v60, %v777_v38  ;;  %v476_v3 = vadd.f32 %v439_v10, %v770_v36  ;;  %v477_v6 = vadd.f32 %v440_v12, %v789_v43  ;;  %v478_v56 = vadd.f32 %v441_v52, %v782_v40 }
 0x1b1   :  { %v479_v13 = vadd.f32 %v442_v57, %v801_v48  ;;  %v480_v7 = vadd.f32 %v443_v63, %v794_v46  ;;  %v481_v14 = vadd.f32 %v444_v53, %v768_v35  ;;  %v482_v34 = vadd.f32 %v445_v58, %v763_v44  ;;  %489 = vst [vmem:[#allocation7] sm:$0xff] %v473_v0 }
 0x1b2   :  { %490 = vst [vmem:[#allocation7 + $0x8] sm:$0xff] %v474_v33  ;;  %v483_v41 = vadd.f32 %v446_v30, %v780_v39  ;;  %v484_v36 = vadd.f32 %v447_v2, %v772_v37  ;;  %v485_v38 = vadd.f32 %v448_v31, %v792_v45  ;;  %v486_v40 = vadd.f32 %v449_v55, %v784_v42 }
 0x1b3   :  { %491 = vst [vmem:[#allocation7 + $0x10] sm:$0xff] %v475_v5  ;;  %492 = vst [vmem:[#allocation7 + $0x18] sm:$0xff] %v476_v3  ;;  %v487_v43 = vadd.f32 %v450_v32, %v804_v49  ;;  %v488_v35 = vadd.f32 %v451_v61, %v796_v47 }
 0x1b4   :  { %493 = vst [vmem:[#allocation7 + $0x20] sm:$0xff] %v477_v6  ;;  %494 = vst [vmem:[#allocation7 + $0x28] sm:$0xff] %v478_v56 }
 0x1b5   :  { %495 = vst [vmem:[#allocation7 + $0x30] sm:$0xff] %v479_v13  ;;  %496 = vst [vmem:[#allocation7 + $0x38] sm:$0xff] %v480_v7 }
 0x1b6   :  { %497 = vst [vmem:[#allocation7 + $0x40] sm:$0xff] %v481_v14  ;;  %498 = vst [vmem:[#allocation7 + $0x48] sm:$0xff] %v482_v34 }
 0x1b7   :  { %499 = vst [vmem:[#allocation7 + $0x50] sm:$0xff] %v483_v41  ;;  %500 = vst [vmem:[#allocation7 + $0x58] sm:$0xff] %v484_v36 }
 0x1b8   :  { %501 = vst [vmem:[#allocation7 + $0x60] sm:$0xff] %v485_v38  ;;  %502 = vst [vmem:[#allocation7 + $0x68] sm:$0xff] %v486_v40 }
 0x1b9   :  { %503 = vst [vmem:[#allocation7 + $0x70] sm:$0xff] %v487_v43  ;;  %504 = vst [vmem:[#allocation7 + $0x78] sm:$0xff] %v488_v35 }
 0x1ba   :  { %687 = shalt.err (!%p684_p6)
}
 0x1bb   :  { %s688_s17 = scalar_lea.hbm %s944_s3, 2048 }
 0x1bc   :  { %p689_p7 = scmp.ne.s32.totalorder %s944_s3, %s688_s17  ;;  %p692_p8 = scmp.lt.u32.totalorder %s688_s17, %s944_s3 }
 0x1be   :  { %p694_p9 = pnand %p692_p8, %p689_p7 }
 0x1c0   :  { %697 = shalt.err (!%p694_p9)
}
 0x1c1   :  { %516 = dma.vmem_to_hbm [thread:$0]  %s511_s13, 2048, %s944_s3, [#allocation4], %s705_s22, %s705_s22, %s706_s23  }
 0x1c2   :  { %702 = dma.done.wait [#allocation4], 2048  }
 0x1c3   :  { %703 = vsyncadd [#allocation4], 4294965248 }
 0x1c4   :  { %520 = vsyncpa [#allocation3], 1 }
 0x1c5   :  { %521 = vsyncpa [#allocation6], 1 }
 0x1c6   :  { %522 = vsyncpa [#allocation4], 1 }

</bundles_post_ra>
